<compile_context>
chip_gen: v7x
topology: tpu7x:2x2x1
jax: 0.10.0
libtpu: 0.0.40
codegen_flags: <defaults>
</compile_context>

<pallas_src>
import functools
import math

import jax
import jax.numpy as jnp
from jax.experimental import pallas as pl
from jax.experimental.pallas import tpu as pltpu

PAD = 128          # lane-dense width used for every hidden layer inside the kernel
N_LAYERS = 9


def layer_dims(input_size=4, action_size=8):
    return [(input_size, 32), (32, 64), (64, 64), (64, 32),
            (32, 32), (32, 64), (64, 64), (64, 32), (32, action_size)]


def _round_up(n, m):
    return ((n + m - 1) // m) * m


def _mlp_kernel(x_ref, w_ref, b_ref, o_ref, *, n_layers, in_size, action_size):
    """x_ref: (TB, in_size) f32 (lanes unpadded); w_ref: (L, 128, 128) bf16;
    b_ref: (L, 1, 128) f32; o_ref: (TB, action_size) f32."""
    # Layer 1: K = in_size matmul straight off the unpadded input block -- no 128-lane
    # padded copy of x ever exists (neither in HBM nor in VMEM).
    x = x_ref[...].astype(jnp.bfloat16)                        # (TB, in_size) bf16
    w0 = w_ref[0, pl.ds(0, in_size), :]                        # (in_size, 128) bf16
    acc = jnp.dot(x, w0, preferred_element_type=jnp.float32) + b_ref[0]
    h = jnp.maximum(acc, 0.0).astype(jnp.bfloat16)             # ReLU in f32, back to bf16

    for i in range(1, n_layers - 1):                           # statically unrolled
        acc = jnp.dot(h, w_ref[i], preferred_element_type=jnp.float32) + b_ref[i]
        h = jnp.maximum(acc, 0.0).astype(jnp.bfloat16)

    final = jnp.dot(h, w_ref[n_layers - 1],
                    preferred_element_type=jnp.float32) + b_ref[n_layers - 1]
    # Write back only the real action lanes (32 B/row instead of 512 B/row).
    o_ref[...] = final[:, :action_size].astype(o_ref.dtype)


def dqn_ob_net_forward(x, w_stack, b_stack, *, action_size=8, block_batch=512):
    """x: (B, input_size) f32.  w_stack: (L, 128, 128) bf16 (zero-padded, already
    transposed to (in, out)).  b_stack: (L, 1, 128) f32 (zero-padded).
    Returns (B, action_size) f32."""
    B, in_size = x.shape
    n_layers = w_stack.shape[0]

    # Batch tile: multiple of 16 sublanes (bf16 packing), capped at block_batch.
    tb = min(block_batch, _round_up(B, 16))
    # Keep >= 2 grid steps when the batch allows it so the "parallel" batch axis can be
    # split across v7x's two TensorCores (shrink tb rather than collapse to a 1-step grid).
    while tb > 16 and pl.cdiv(B, tb) < 2:
        tb = _round_up(tb // 2, 16)
    b_padded = _round_up(B, tb)

    # Only the batch dim is (cheaply) padded; feature lanes stay at in_size.
    if b_padded != B:
        x = jnp.pad(x, ((0, b_padded - B), (0, 0)))

    grid = (b_padded // tb,)
    kernel = functools.partial(_mlp_kernel, n_layers=n_layers,
                               in_size=in_size, action_size=action_size)

    flops = 2 * b_padded * n_layers * PAD * PAD
    bytes_accessed = (b_padded * in_size * 4 + w_stack.size * 2 + b_stack.size * 4
                      + b_padded * action_size * 4)

    out = pl.pallas_call(
        kernel,
        out_shape=jax.ShapeDtypeStruct((b_padded, action_size), jnp.float32),
        grid_spec=pltpu.PrefetchScalarGridSpec(
            num_scalar_prefetch=0,
            grid=grid,
            in_specs=[
                pl.BlockSpec((tb, in_size), lambda i: (i, 0)),             # batch tile of x
                pl.BlockSpec((n_layers, PAD, PAD), lambda i: (0, 0, 0)),   # weights, resident
                pl.BlockSpec((n_layers, 1, PAD), lambda i: (0, 0, 0)),     # biases, resident
            ],
            out_specs=pl.BlockSpec((tb, action_size), lambda i: (i, 0)),
        ),
        compiler_params=pltpu.CompilerParams(
            dimension_semantics=("parallel",)),
        cost_estimate=pl.CostEstimate(
            flops=flops, transcendentals=0, bytes_accessed=bytes_accessed),
    )(x, w_stack, b_stack)

    return out[:B] if b_padded != B else out


def init_params(key, input_size=4, action_size=8):
    """PyTorch-default Linear init (U[-1/sqrt(fan_in), +1/sqrt(fan_in)]).
    Returns (raw unpadded params, stacked bf16 weights, stacked f32 biases)."""
    dims = layer_dims(input_size, action_size)
    raw = []
    w_stack = jnp.zeros((len(dims), PAD, PAD), jnp.float32)
    b_stack = jnp.zeros((len(dims), 1, PAD), jnp.float32)
    for i, (fan_in, fan_out) in enumerate(dims):
        key, kw, kb = jax.random.split(key, 3)
        bound = 1.0 / math.sqrt(fan_in)
        # (in, out) = transpose of PyTorch's (out, in) so the kernel does plain h @ W + b.
        w = jax.random.uniform(kw, (fan_in, fan_out), jnp.float32, -bound, bound)
        b = jax.random.uniform(kb, (fan_out,), jnp.float32, -bound, bound)
        raw.append((w, b))
        w_stack = w_stack.at[i, :fan_in, :fan_out].set(w)
        b_stack = b_stack.at[i, 0, :fan_out].set(b)
    return raw, w_stack.astype(jnp.bfloat16), b_stack


def reference_forward_mirrored(x, raw_params):
    """Mirrors the kernel math (bf16 operands, f32 accumulation) on unpadded weights;
    validates that the zero-padding inside the kernel changes nothing."""
    h = x.astype(jnp.bfloat16)
    for i, (w, b) in enumerate(raw_params):
        acc = jnp.dot(h, w.astype(jnp.bfloat16),
                      preferred_element_type=jnp.float32) + b
        h = jnp.maximum(acc, 0.0).astype(jnp.bfloat16) if i < len(raw_params) - 1 else acc
    return h


def reference_forward_f32(x, raw_params):
    h = x
    for i, (w, b) in enumerate(raw_params):
        h = h @ w + b
        if i < len(raw_params) - 1:
            h = jnp.maximum(h, 0.0)
    return h


if __name__ == "__main__":
    key = jax.random.PRNGKey(0)
    key, kx = jax.random.split(key)

    # Small test shapes; batch deliberately NOT a multiple of 16 so the tile-shrinking
    # logic (tb=32, grid=2, 24 padded rows in the last block) is exercised.
    batch, input_size, action_size = 40, 4, 8
    x = jax.random.normal(kx, (batch, input_size), jnp.float32)
    raw_params, w_stack, b_stack = init_params(key, input_size, action_size)

    out = dqn_ob_net_forward(x, w_stack, b_stack, action_size=action_size)
    out = jax.block_until_ready(out)
    assert out.shape == (batch, action_size)

    ref_bf16 = reference_forward_mirrored(x, raw_params)
    ref_f32 = reference_forward_f32(x, raw_params)
    assert jnp.allclose(out, ref_bf16, atol=2e-2, rtol=2e-2), \
        "mismatch vs bf16-mirrored reference"
    assert jnp.allclose(out, ref_f32, atol=2e-1, rtol=0.0), \
        "mismatch vs f32 reference (beyond bf16 tolerance)"

    print("KERNEL_OK")
</pallas_src>

<mosaic_0001>
module attributes {stable_mosaic.version = 11 : i64} {
  func.func @_mlp_kernel(%arg0: i32, %arg1: memref<32x4xf32, #tpu.memory_space<vmem>>, %arg2: memref<9x128x128xbf16, #tpu.memory_space<vmem>>, %arg3: memref<9x1x128xf32, #tpu.memory_space<vmem>>, %arg4: memref<32x8xf32, #tpu.memory_space<vmem>>) attributes {dimension_semantics = [#tpu.dimension_semantics<parallel>], iteration_bounds = array<i64: 2>, scalar_prefetch = 0 : i64, scratch_operands = 0 : i64, tpu.core_type = #tpu.core_type<tc>, window_params = [{transform_indices = @transform_0, window_bounds = array<i64: 32, 4>}, {pipeline_mode = #tpu.pipeline_mode<synchronous>, transform_indices = @transform_1, window_bounds = array<i64: 9, 128, 128>}, {pipeline_mode = #tpu.pipeline_mode<synchronous>, transform_indices = @transform_2, window_bounds = array<i64: 9, 1, 128>}, {transform_indices = @transform_3, window_bounds = array<i64: 32, 8>}]} {
    %c0 = arith.constant 0 : index
    %c0_0 = arith.constant 0 : index
    %0 = vector.load %arg1[%c0, %c0_0] : memref<32x4xf32, #tpu.memory_space<vmem>>, vector<32x4xf32>
    %1 = arith.truncf %0 : vector<32x4xf32> to vector<32x4xbf16>
    %c0_1 = arith.constant 0 : index
    %c0_2 = arith.constant 0 : index
    %c0_3 = arith.constant 0 : index
    %2 = vector.load %arg2[%c0_1, %c0_2, %c0_3] : memref<9x128x128xbf16, #tpu.memory_space<vmem>>, vector<1x4x128xbf16>
    %3 = vector.shape_cast %2 : vector<1x4x128xbf16> to vector<4x128xbf16>
    %cst = arith.constant dense<0.000000e+00> : vector<32x128xf32>
    %4 = tpu.matmul %1, %3, %cst {dimension_numbers = #tpu.dot_dimension_numbers<[1], [0], [0], [1], [0, 0, 1, 1], [], []>} : vector<32x4xbf16>, vector<4x128xbf16>, vector<32x128xf32> -> vector<32x128xf32>
    %c0_4 = arith.constant 0 : index
    %c0_5 = arith.constant 0 : index
    %c0_6 = arith.constant 0 : index
    %5 = vector.load %arg3[%c0_4, %c0_5, %c0_6] : memref<9x1x128xf32, #tpu.memory_space<vmem>>, vector<1x1x128xf32>
    %6 = vector.shape_cast %5 : vector<1x1x128xf32> to vector<1x128xf32>
    %7 = vector.broadcast %6 : vector<1x128xf32> to vector<32x128xf32>
    %8 = arith.addf %4, %7 : vector<32x128xf32>
    %cst_7 = arith.constant 0.000000e+00 : f32
    %9 = vector.broadcast %cst_7 : f32 to vector<32x128xf32>
    %10 = arith.maximumf %8, %9 : vector<32x128xf32>
    %11 = arith.truncf %10 : vector<32x128xf32> to vector<32x128xbf16>
    %c1 = arith.constant 1 : index
    %c0_8 = arith.constant 0 : index
    %c0_9 = arith.constant 0 : index
    %12 = vector.load %arg2[%c1, %c0_8, %c0_9] : memref<9x128x128xbf16, #tpu.memory_space<vmem>>, vector<1x128x128xbf16>
    %13 = vector.shape_cast %12 : vector<1x128x128xbf16> to vector<128x128xbf16>
    %cst_10 = arith.constant dense<0.000000e+00> : vector<32x128xf32>
    %14 = tpu.matmul %11, %13, %cst_10 {dimension_numbers = #tpu.dot_dimension_numbers<[1], [0], [0], [1], [0, 0, 1, 1], [], []>} : vector<32x128xbf16>, vector<128x128xbf16>, vector<32x128xf32> -> vector<32x128xf32>
    %c1_11 = arith.constant 1 : index
    %c0_12 = arith.constant 0 : index
    %c0_13 = arith.constant 0 : index
    %15 = vector.load %arg3[%c1_11, %c0_12, %c0_13] : memref<9x1x128xf32, #tpu.memory_space<vmem>>, vector<1x1x128xf32>
    %16 = vector.shape_cast %15 : vector<1x1x128xf32> to vector<1x128xf32>
    %17 = vector.broadcast %16 : vector<1x128xf32> to vector<32x128xf32>
    %18 = arith.addf %14, %17 : vector<32x128xf32>
    %cst_14 = arith.constant 0.000000e+00 : f32
    %19 = vector.broadcast %cst_14 : f32 to vector<32x128xf32>
    %20 = arith.maximumf %18, %19 : vector<32x128xf32>
    %21 = arith.truncf %20 : vector<32x128xf32> to vector<32x128xbf16>
    %c2 = arith.constant 2 : index
    %c0_15 = arith.constant 0 : index
    %c0_16 = arith.constant 0 : index
    %22 = vector.load %arg2[%c2, %c0_15, %c0_16] : memref<9x128x128xbf16, #tpu.memory_space<vmem>>, vector<1x128x128xbf16>
    %23 = vector.shape_cast %22 : vector<1x128x128xbf16> to vector<128x128xbf16>
    %cst_17 = arith.constant dense<0.000000e+00> : vector<32x128xf32>
    %24 = tpu.matmul %21, %23, %cst_17 {dimension_numbers = #tpu.dot_dimension_numbers<[1], [0], [0], [1], [0, 0, 1, 1], [], []>} : vector<32x128xbf16>, vector<128x128xbf16>, vector<32x128xf32> -> vector<32x128xf32>
    %c2_18 = arith.constant 2 : index
    %c0_19 = arith.constant 0 : index
    %c0_20 = arith.constant 0 : index
    %25 = vector.load %arg3[%c2_18, %c0_19, %c0_20] : memref<9x1x128xf32, #tpu.memory_space<vmem>>, vector<1x1x128xf32>
    %26 = vector.shape_cast %25 : vector<1x1x128xf32> to vector<1x128xf32>
    %27 = vector.broadcast %26 : vector<1x128xf32> to vector<32x128xf32>
    %28 = arith.addf %24, %27 : vector<32x128xf32>
    %cst_21 = arith.constant 0.000000e+00 : f32
    %29 = vector.broadcast %cst_21 : f32 to vector<32x128xf32>
    %30 = arith.maximumf %28, %29 : vector<32x128xf32>
    %31 = arith.truncf %30 : vector<32x128xf32> to vector<32x128xbf16>
    %c3 = arith.constant 3 : index
    %c0_22 = arith.constant 0 : index
    %c0_23 = arith.constant 0 : index
    %32 = vector.load %arg2[%c3, %c0_22, %c0_23] : memref<9x128x128xbf16, #tpu.memory_space<vmem>>, vector<1x128x128xbf16>
    %33 = vector.shape_cast %32 : vector<1x128x128xbf16> to vector<128x128xbf16>
    %cst_24 = arith.constant dense<0.000000e+00> : vector<32x128xf32>
    %34 = tpu.matmul %31, %33, %cst_24 {dimension_numbers = #tpu.dot_dimension_numbers<[1], [0], [0], [1], [0, 0, 1, 1], [], []>} : vector<32x128xbf16>, vector<128x128xbf16>, vector<32x128xf32> -> vector<32x128xf32>
    %c3_25 = arith.constant 3 : index
    %c0_26 = arith.constant 0 : index
    %c0_27 = arith.constant 0 : index
    %35 = vector.load %arg3[%c3_25, %c0_26, %c0_27] : memref<9x1x128xf32, #tpu.memory_space<vmem>>, vector<1x1x128xf32>
    %36 = vector.shape_cast %35 : vector<1x1x128xf32> to vector<1x128xf32>
    %37 = vector.broadcast %36 : vector<1x128xf32> to vector<32x128xf32>
    %38 = arith.addf %34, %37 : vector<32x128xf32>
    %cst_28 = arith.constant 0.000000e+00 : f32
    %39 = vector.broadcast %cst_28 : f32 to vector<32x128xf32>
    %40 = arith.maximumf %38, %39 : vector<32x128xf32>
    %41 = arith.truncf %40 : vector<32x128xf32> to vector<32x128xbf16>
    %c4 = arith.constant 4 : index
    %c0_29 = arith.constant 0 : index
    %c0_30 = arith.constant 0 : index
    %42 = vector.load %arg2[%c4, %c0_29, %c0_30] : memref<9x128x128xbf16, #tpu.memory_space<vmem>>, vector<1x128x128xbf16>
    %43 = vector.shape_cast %42 : vector<1x128x128xbf16> to vector<128x128xbf16>
    %cst_31 = arith.constant dense<0.000000e+00> : vector<32x128xf32>
    %44 = tpu.matmul %41, %43, %cst_31 {dimension_numbers = #tpu.dot_dimension_numbers<[1], [0], [0], [1], [0, 0, 1, 1], [], []>} : vector<32x128xbf16>, vector<128x128xbf16>, vector<32x128xf32> -> vector<32x128xf32>
    %c4_32 = arith.constant 4 : index
    %c0_33 = arith.constant 0 : index
    %c0_34 = arith.constant 0 : index
    %45 = vector.load %arg3[%c4_32, %c0_33, %c0_34] : memref<9x1x128xf32, #tpu.memory_space<vmem>>, vector<1x1x128xf32>
    %46 = vector.shape_cast %45 : vector<1x1x128xf32> to vector<1x128xf32>
    %47 = vector.broadcast %46 : vector<1x128xf32> to vector<32x128xf32>
    %48 = arith.addf %44, %47 : vector<32x128xf32>
    %cst_35 = arith.constant 0.000000e+00 : f32
    %49 = vector.broadcast %cst_35 : f32 to vector<32x128xf32>
    %50 = arith.maximumf %48, %49 : vector<32x128xf32>
    %51 = arith.truncf %50 : vector<32x128xf32> to vector<32x128xbf16>
    %c5 = arith.constant 5 : index
    %c0_36 = arith.constant 0 : index
    %c0_37 = arith.constant 0 : index
    %52 = vector.load %arg2[%c5, %c0_36, %c0_37] : memref<9x128x128xbf16, #tpu.memory_space<vmem>>, vector<1x128x128xbf16>
    %53 = vector.shape_cast %52 : vector<1x128x128xbf16> to vector<128x128xbf16>
    %cst_38 = arith.constant dense<0.000000e+00> : vector<32x128xf32>
    %54 = tpu.matmul %51, %53, %cst_38 {dimension_numbers = #tpu.dot_dimension_numbers<[1], [0], [0], [1], [0, 0, 1, 1], [], []>} : vector<32x128xbf16>, vector<128x128xbf16>, vector<32x128xf32> -> vector<32x128xf32>
    %c5_39 = arith.constant 5 : index
    %c0_40 = arith.constant 0 : index
    %c0_41 = arith.constant 0 : index
    %55 = vector.load %arg3[%c5_39, %c0_40, %c0_41] : memref<9x1x128xf32, #tpu.memory_space<vmem>>, vector<1x1x128xf32>
    %56 = vector.shape_cast %55 : vector<1x1x128xf32> to vector<1x128xf32>
    %57 = vector.broadcast %56 : vector<1x128xf32> to vector<32x128xf32>
    %58 = arith.addf %54, %57 : vector<32x128xf32>
    %cst_42 = arith.constant 0.000000e+00 : f32
    %59 = vector.broadcast %cst_42 : f32 to vector<32x128xf32>
    %60 = arith.maximumf %58, %59 : vector<32x128xf32>
    %61 = arith.truncf %60 : vector<32x128xf32> to vector<32x128xbf16>
    %c6 = arith.constant 6 : index
    %c0_43 = arith.constant 0 : index
    %c0_44 = arith.constant 0 : index
    %62 = vector.load %arg2[%c6, %c0_43, %c0_44] : memref<9x128x128xbf16, #tpu.memory_space<vmem>>, vector<1x128x128xbf16>
    %63 = vector.shape_cast %62 : vector<1x128x128xbf16> to vector<128x128xbf16>
    %cst_45 = arith.constant dense<0.000000e+00> : vector<32x128xf32>
    %64 = tpu.matmul %61, %63, %cst_45 {dimension_numbers = #tpu.dot_dimension_numbers<[1], [0], [0], [1], [0, 0, 1, 1], [], []>} : vector<32x128xbf16>, vector<128x128xbf16>, vector<32x128xf32> -> vector<32x128xf32>
    %c6_46 = arith.constant 6 : index
    %c0_47 = arith.constant 0 : index
    %c0_48 = arith.constant 0 : index
    %65 = vector.load %arg3[%c6_46, %c0_47, %c0_48] : memref<9x1x128xf32, #tpu.memory_space<vmem>>, vector<1x1x128xf32>
    %66 = vector.shape_cast %65 : vector<1x1x128xf32> to vector<1x128xf32>
    %67 = vector.broadcast %66 : vector<1x128xf32> to vector<32x128xf32>
    %68 = arith.addf %64, %67 : vector<32x128xf32>
    %cst_49 = arith.constant 0.000000e+00 : f32
    %69 = vector.broadcast %cst_49 : f32 to vector<32x128xf32>
    %70 = arith.maximumf %68, %69 : vector<32x128xf32>
    %71 = arith.truncf %70 : vector<32x128xf32> to vector<32x128xbf16>
    %c7 = arith.constant 7 : index
    %c0_50 = arith.constant 0 : index
    %c0_51 = arith.constant 0 : index
    %72 = vector.load %arg2[%c7, %c0_50, %c0_51] : memref<9x128x128xbf16, #tpu.memory_space<vmem>>, vector<1x128x128xbf16>
    %73 = vector.shape_cast %72 : vector<1x128x128xbf16> to vector<128x128xbf16>
    %cst_52 = arith.constant dense<0.000000e+00> : vector<32x128xf32>
    %74 = tpu.matmul %71, %73, %cst_52 {dimension_numbers = #tpu.dot_dimension_numbers<[1], [0], [0], [1], [0, 0, 1, 1], [], []>} : vector<32x128xbf16>, vector<128x128xbf16>, vector<32x128xf32> -> vector<32x128xf32>
    %c7_53 = arith.constant 7 : index
    %c0_54 = arith.constant 0 : index
    %c0_55 = arith.constant 0 : index
    %75 = vector.load %arg3[%c7_53, %c0_54, %c0_55] : memref<9x1x128xf32, #tpu.memory_space<vmem>>, vector<1x1x128xf32>
    %76 = vector.shape_cast %75 : vector<1x1x128xf32> to vector<1x128xf32>
    %77 = vector.broadcast %76 : vector<1x128xf32> to vector<32x128xf32>
    %78 = arith.addf %74, %77 : vector<32x128xf32>
    %cst_56 = arith.constant 0.000000e+00 : f32
    %79 = vector.broadcast %cst_56 : f32 to vector<32x128xf32>
    %80 = arith.maximumf %78, %79 : vector<32x128xf32>
    %81 = arith.truncf %80 : vector<32x128xf32> to vector<32x128xbf16>
    %c8 = arith.constant 8 : index
    %c0_57 = arith.constant 0 : index
    %c0_58 = arith.constant 0 : index
    %82 = vector.load %arg2[%c8, %c0_57, %c0_58] : memref<9x128x128xbf16, #tpu.memory_space<vmem>>, vector<1x128x128xbf16>
    %83 = vector.shape_cast %82 : vector<1x128x128xbf16> to vector<128x128xbf16>
    %cst_59 = arith.constant dense<0.000000e+00> : vector<32x128xf32>
    %84 = tpu.matmul %81, %83, %cst_59 {dimension_numbers = #tpu.dot_dimension_numbers<[1], [0], [0], [1], [0, 0, 1, 1], [], []>} : vector<32x128xbf16>, vector<128x128xbf16>, vector<32x128xf32> -> vector<32x128xf32>
    %c8_60 = arith.constant 8 : index
    %c0_61 = arith.constant 0 : index
    %c0_62 = arith.constant 0 : index
    %85 = vector.load %arg3[%c8_60, %c0_61, %c0_62] : memref<9x1x128xf32, #tpu.memory_space<vmem>>, vector<1x1x128xf32>
    %86 = vector.shape_cast %85 : vector<1x1x128xf32> to vector<1x128xf32>
    %87 = vector.broadcast %86 : vector<1x128xf32> to vector<32x128xf32>
    %88 = arith.addf %84, %87 : vector<32x128xf32>
    %89 = vector.extract_strided_slice %88 {offsets = [0, 0], sizes = [32, 8], strides = [1, 1]} : vector<32x128xf32> to vector<32x8xf32>
    %c0_63 = arith.constant 0 : index
    %c0_64 = arith.constant 0 : index
    %90 = vector.load %arg4[%c0_63, %c0_64] : memref<32x8xf32, #tpu.memory_space<vmem>>, vector<32x8xf32>
    tpu.vector_store %arg4[%c0_63, %c0_64], %89 {strides = array<i32>} : memref<32x8xf32, #tpu.memory_space<vmem>>, vector<32x8xf32>,
    return
  }
  func.func @transform_0(%arg0: i32) -> (i32, i32) {
    %c0_i32 = arith.constant 0 : i32
    %c0_i32_0 = arith.constant 0 : i32
    return %arg0, %c0_i32 : i32, i32
  }
  func.func @transform_1(%arg0: i32) -> (i32, i32, i32) {
    %c0_i32 = arith.constant 0 : i32
    %c0_i32_0 = arith.constant 0 : i32
    %c0_i32_1 = arith.constant 0 : i32
    %c0_i32_2 = arith.constant 0 : i32
    return %c0_i32, %c0_i32_0, %c0_i32_1 : i32, i32, i32
  }
  func.func @transform_2(%arg0: i32) -> (i32, i32, i32) {
    %c0_i32 = arith.constant 0 : i32
    %c0_i32_0 = arith.constant 0 : i32
    %c0_i32_1 = arith.constant 0 : i32
    %c0_i32_2 = arith.constant 0 : i32
    return %c0_i32, %c0_i32_0, %c0_i32_1 : i32, i32, i32
  }
  func.func @transform_3(%arg0: i32) -> (i32, i32) {
    %c0_i32 = arith.constant 0 : i32
    %c0_i32_0 = arith.constant 0 : i32
    return %arg0, %c0_i32 : i32, i32
  }
}

</mosaic_0001>

<bundles_post_ra>
// kernel: tpu_custom_call.1
= control target key start
LH: loop header
LB: loop body
LE: loop exit
PB: predicated region body
PF: predicated region fallthrough
CT: control target
= control target key end

     0   :  { %8 = vsyncpa [#allocation3], 0  ;;  %s1855_s12 = smov 0   ;;  %s1948_s0 = inlined_call_operand.vmem [shape: f32[64,4], index: 0, kind: input, shape index: {}]   ;;  %s1949_s1 = inlined_call_operand.hbm [shape: bf16[9,128,128], index: 1, kind: input, shape index: {}]   ;;  %s1950_s2 = inlined_call_operand.vmem [shape: f32[9,1,128], index: 2, kind: input, shape index: {}]   ;;  %s1951_s3 = inlined_call_operand.vmem [shape: f32[64,8], index: 3, kind: output, shape index: {}]  }
   0x1 LB: > { %s1361_s13 = sadd.s32 4294967295, %s1830_s12   ;;  %p1363_p0 = scmp.ge.s32.totalorder %s1830_s12, 1  ;;  %s1830_s12 = sphi %s1855_s12, %s14_s12  }
   0x2   : > { %p113_p1 = scmp.lt.s32.totalorder %s1830_s12, 3  ;;  %s1832_s14 = smov [#allocation2]  }
   0x3   : > { %s125_s15 = sshll.u32 %s1832_s14, 4  ;;  %p1869_p3 = scmp.eq.s32.totalorder %s1361_s13, 0  ;;  %s126_s15 = int_to_ptr.vmem [resolvable:$true] %s125_s15 }
   0x4   : > { %p1863_p2 = pnand %p1363_p0, %p113_p1  ;;  %s1792_s21 = scalar_lea.hbm %s1949_s1, 9216 }
   0x5   : > { %s1956_s17 = scalar_select %p1869_p3, 1, 0 }
   0x6   : > { %s1955_s16 = scalar_select %p1863_p2, 1, 0 }
   0x7   : > { %p1711_p4 = pneg %p1863_p2  ;;  %p1793_p6 = scmp.ne.s32.totalorder %s1949_s1, %s1792_s21 }
   0x8   : > { %p1799_p10 = scmp.lt.u32.totalorder %s1792_s21, %s1949_s1 }
   0x9   : > { %p1877_p5 = pnand %p1869_p3, %p1711_p4 }
   0xb   : > { %p1794_p7 = pneg %p1877_p5 }
   0xd   : > { %p1795_p8 = pnand %p1794_p7, %p1793_p6 }
   0xf   : > { %p1796_p9 = pneg %p1795_p8 }
  0x11   : > { %p1801_p11 = pnand %p1799_p10, %p1796_p9 }
  0x13   : > { %1804 = shalt.err (!%p1801_p11)
}
  0x14   : > { %s1805_s26 = scalar_lea.vmem %s126_s15, 9216  ;;  %p1813_p1 = scmp.lt.s32.totalorder %s126_s15, %s126_s15 }
  0x15   : > { %p1806_p12 = scmp.ne.s32.totalorder %s126_s15, %s1805_s26  ;;  %p1814_p4 = scmp.lt.s32.totalorder %s1805_s26, %s1805_s26 }
  0x17   : > { %p1808_p13 = pnand %p1806_p12, %p1794_p7  ;;  %p1815_p3 = por %p1814_p4, %p1813_p1 }
  0x19   : > { %p1809_p0 = pneg %p1808_p13 }
  0x1b   : > { %p1816_p2 = pnand %p1815_p3, %p1809_p0 }
  0x1d   : > { %1819 = shalt.err (!%p1816_p2)
}
  0x1e   : > { %s1833_s27 = smov 64   ;;  %s1834_s28 = smov 4  }
  0x1f   : > { %1714 = dma.hbm_to_vmem [thread:$0]  (!%p1877_p5), %s1949_s1, 9216, %s126_s15, [#allocation3], %s1833_s27, %s1833_s27, %s1834_s28  }
  0x20   : > { %p1958_p6 = scmp.ne.s32.totalorder %s1955_s16, 0 }
  0x21   : > { %p1959_p8 = scmp.ne.s32.totalorder (!%p1958_p6), %s1956_s17, 0 }
  0x22   : > { %153 = sbr.rel (%p1958_p6) target bundleno = 2046 (0x7fe), region = 32 }
  0x29   : > { %1825 = dma.done.wait (%p1959_p8), [#allocation3], 9216  }
  0x2a   : > { %1827 = vsyncadd (%p1959_p8), [#allocation3], 4294958080  ;;  %s1368_s4 = sshll.u32 %s1361_s13, 2  ;;  %vm211_vm0 = vcmask 1041408   ;;  %v196_v0 = vld [vmem:[#allocation2] sm:$0x3] }
  0x2b   : > { %p178_p2 = scmp.lt.s32.totalorder %s1368_s4, 7  ;;  %vm204_vm1 = vcmask 31744   ;;  %1706 = vmatprep.subr.msk.bf16.mxu0 %vm211_vm0, %v196_v0  ;;  %v213_v3 = vsel %vm211_vm0, %v196_v0, 0  ;;  %v1728_v8 = vld [vmem:[#allocation2 + $0x40] sm:$0xff]   ;;  %v1729_v9 = vld [vmem:[#allocation2 + $0x48] sm:$0xff]   ;;  %v1730_v10 = vld [vmem:[#allocation2 + $0x50] sm:$0xff]  }
  0x2c   : > { %1541 = vmatpush3.bf16.msra.mxu0 %v213_v3  ;;  %1546 = vmatprep.subr.bf16.mxu1 %v1728_v8  ;;  %v1731_v11 = vld [vmem:[#allocation2 + $0x58] sm:$0xff]   ;;  %v1732_v12 = vld [vmem:[#allocation2 + $0x60] sm:$0xff]   ;;  %v1733_v13 = vld [vmem:[#allocation2 + $0x68] sm:$0xff]   ;;  %vm1288_vm2 = vcmask 64512  }
  0x2d   : > { %s1961_s4 = smov (!%p178_p2, %s1368_s4), 7  ;;  %1547 = vmatpush3.bf16.msra.mxu1 %v1728_v8  ;;  %v1734_v14 = vld [vmem:[#allocation2 + $0x70] sm:$0xff]   ;;  %v1735_v15 = vld [vmem:[#allocation2 + $0x78] sm:$0xff]   ;;  %v1736_v16 = vld [vmem:[#allocation2 + $0x80] sm:$0xff]  }
  0x2e   : > { %s1369_s5 = sshll.u32 %s1961_s4, 3  ;;  %1548 = vmatprep.subr.bf16.mxu1 %v1729_v9  ;;  %v1737_v17 = vld [vmem:[#allocation2 + $0x88] sm:$0xff]   ;;  %1566 = vmatprep.subr.bf16.mxu0 %v1736_v16  ;;  %v1738_v18 = vld [vmem:[#allocation2 + $0x90] sm:$0xff]   ;;  %v1739_v19 = vld [vmem:[#allocation2 + $0x98] sm:$0xff]  }
  0x2f   : > { %s181_s8 = scalar_lea.vmem %s1948_s0, %s1369_s5  ;;  %v1740_v20 = vld [vmem:[#allocation2 + $0xa0] sm:$0xff]   ;;  %v1741_v21 = vld [vmem:[#allocation2 + $0xa8] sm:$0xff]   ;;  %v1742_v37 = vld [vmem:[#allocation2 + $0xb0] sm:$0xff]   ;;  %s187_s30 = scalar_lea.vmem %s1951_s3, %s1369_s5 }
  0x30   : > { %v190_v1 = vld [vmem:[%s181_s8] sm:$0xff]  ;;  %v191_v2 = vld [vmem:[%s181_s8 + $0x8] sm:$0xff]  ;;  %v192_v5 = vld [vmem:[%s181_s8 + $0x10] sm:$0xff] }
  0x31   : > { %v194_v4 = vpack.c.bf16 %v191_v2, %v190_v1  ;;  %v193_v6 = vld [vmem:[%s181_s8 + $0x18] sm:$0xff]  ;;  %1549 = vmatpush3.bf16.msra.mxu1 %v1729_v9  ;;  %v1372_v22 = vld [vmem:[%s1950_s2] ss:$0 sm:$0xff]  ;;  %v1745_v40 = vld [vmem:[#allocation2 + $0xc8] sm:$0xff]  }
  0x32   : > { %v195_v7 = vpack.c.bf16 %v193_v6, %v192_v5  ;;  %1550 = vmatprep.subr.bf16.mxu1 %v1730_v10  ;;  %v1743_v38 = vld [vmem:[#allocation2 + $0xb8] sm:$0xff]   ;;  %v1744_v39 = vld [vmem:[#allocation2 + $0xc0] sm:$0xff]   ;;  %v1746_v41 = vld [vmem:[#allocation2 + $0xd0] sm:$0xff]  }
  0x33   : > { %1542 = vmatprep.mubr.msk.bf16.mxu0 %vm204_vm1, %v194_v4  ;;  %v1747_v42 = vld [vmem:[#allocation2 + $0xd8] sm:$0xff]   ;;  %v1748_v43 = vld [vmem:[#allocation2 + $0xe0] sm:$0xff]   ;;  %v1749_v44 = vld [vmem:[#allocation2 + $0xe8] sm:$0xff]  }
  0x34   : > { %1543 = vmatmul.mubr.msk.bf16.vlgmr.msra.gmra.mrb[0].mxu0 %vm204_vm1, %v195_v7  ;;  %v1376_v45 = vld [vmem:[%s1950_s2 + $0x1] ss:$0 sm:$0xff]  ;;  %v1750_v60 = vld [vmem:[#allocation2 + $0xf0] sm:$0xff]   ;;  %v1751_v61 = vld [vmem:[#allocation2 + $0xf8] sm:$0xff]  }
  0x35   : > { %1551 = vmatpush3.bf16.msra.mxu1 %v1730_v10  ;;  %1567 = vmatpush3.bf16.msra.mxu0 %v1736_v16  ;;  %v1752_v62 = vld [vmem:[#allocation2 + $0x100] sm:$0xff]   ;;  %v1753_v63 = vld [vmem:[#allocation2 + $0x108] sm:$0xff]   ;;  %v1754_v0 = vld [vmem:[#allocation2 + $0x110] sm:$0xff]  }
  0x36   : > { %1552 = vmatprep.subr.bf16.mxu1 %v1731_v11  ;;  %1568 = vmatprep.subr.bf16.mxu0 %v1737_v17  ;;  %v1755_v1 = vld [vmem:[#allocation2 + $0x118] sm:$0xff]   ;;  %v1756_v2 = vld [vmem:[#allocation2 + $0x120] sm:$0xff]   ;;  %v1757_v3 = vld [vmem:[#allocation2 + $0x128] sm:$0xff]  }
  0x37   : > { %v1386_v4 = vld [vmem:[%s1950_s2 + $0x2] ss:$0 sm:$0xff] }
  0x39   : > { %1553 = vmatpush3.bf16.msra.mxu1 %v1731_v11  ;;  %1569 = vmatpush3.bf16.msra.mxu0 %v1737_v17 }
  0x3a   : > { %1554 = vmatprep.subr.bf16.mxu1 %v1732_v12  ;;  %1570 = vmatprep.subr.bf16.mxu0 %v1738_v18 }
  0x3d   : > { %1555 = vmatpush3.bf16.msra.mxu1 %v1732_v12  ;;  %1571 = vmatpush3.bf16.msra.mxu0 %v1738_v18 }
  0x3e   : > { %1556 = vmatprep.subr.bf16.mxu1 %v1733_v13  ;;  %1572 = vmatprep.subr.bf16.mxu0 %v1739_v19 }
  0x41   : > { %1557 = vmatpush3.bf16.msra.mxu1 %v1733_v13  ;;  %1573 = vmatpush3.bf16.msra.mxu0 %v1739_v19  ;;  %v1758_v19 = vld [vmem:[#allocation2 + $0x130] sm:$0xff]  }
  0x42   : > { %1558 = vmatprep.subr.bf16.mxu1 %v1734_v14  ;;  %1574 = vmatprep.subr.bf16.mxu0 %v1740_v20 }
  0x45   : > { %1559 = vmatpush3.bf16.msra.mxu1 %v1734_v14  ;;  %1575 = vmatpush3.bf16.msra.mxu0 %v1740_v20  ;;  %v1759_v20 = vld [vmem:[#allocation2 + $0x138] sm:$0xff]  }
  0x46   : > { %1560 = vmatprep.subr.bf16.mxu1 %v1735_v15  ;;  %1576 = vmatprep.subr.bf16.mxu0 %v1741_v21 }
  0x49   : > { %1561 = vmatpush3.bf16.msra.mxu1 %v1735_v15  ;;  %1577 = vmatpush3.bf16.msra.mxu0 %v1741_v21  ;;  %v1760_v21 = vld [vmem:[#allocation2 + $0x140] sm:$0xff]  }
  0x4a   : > { %1578 = vmatprep.subr.bf16.mxu0 %v1742_v37  ;;  %1586 = vmatprep.subr.bf16.mxu1 %v1744_v39 }
  0x4d   : > { %1579 = vmatpush3.bf16.msra.mxu0 %v1742_v37 }
  0x4e   : > { %1580 = vmatprep.subr.bf16.mxu0 %v1743_v38 }
  0x51   : > { %1581 = vmatpush3.bf16.msra.mxu0 %v1743_v38 }
  0x52   : > { %1606 = vmatprep.subr.bf16.mxu0 %v1752_v62 }
 0x107   : > { %v1544_v23 = vpop.f32.mrb[0].mxu0 }
 0x108   : > { %v258_v24 = vadd.f32 %v1544_v23, %v1372_v22  ;;  %v249_v25 = vpop.f32.mrb[1].mxu0  ;;  %v1762_v23 = vld [vmem:[#allocation2 + $0x150] sm:$0xff]  }
 0x109   : > { %v250_v26 = vadd.f32 %v1372_v22, %v249_v25  ;;  %v1545_v27 = vpop.f32.mrb[2].mxu0  ;;  %v1764_v25 = vld [vmem:[#allocation2 + $0x160] sm:$0xff]  }
 0x10a   : > { %v261_v28 = vadd.f32 %v1545_v27, %v1372_v22  ;;  %v252_v29 = vpop.f32.mrb[3].mxu0  ;;  %v266_v31 = vmax.f32 %v258_v24, 0.0  ;;  %v1763_v24 = vld [vmem:[#allocation2 + $0x158] sm:$0xff]   ;;  %v1396_v27 = vld [vmem:[%s1950_s2 + $0x3] ss:$0 sm:$0xff] }
 0x10b   : > { %v253_v30 = vadd.f32 %v1372_v22, %v252_v29  ;;  %v264_v33 = vmax.f32 %v250_v26, 0.0  ;;  %v1761_v22 = vld [vmem:[#allocation2 + $0x148] sm:$0xff]  }
 0x10c   : > { %v267_v32 = vmax.f32 %v261_v28, 0.0  ;;  %v1765_v26 = vld [vmem:[#allocation2 + $0x168] sm:$0xff]  }
 0x10d   : > { %v265_v34 = vmax.f32 %v253_v30, 0.0 }
 0x10e   : > { %v269_v35 = vpack.c.bf16 %v267_v32, %v266_v31 }
 0x10f   : > { %v268_v36 = vpack.c.bf16 %v265_v34, %v264_v33 }
 0x111   : > { %1562 = vmatprep.mubr.bf16.mxu1 %v268_v36 }
 0x112   : > { %1563 = vmatmul.mubr.bf16.vlgmr.msra.gmra.mrb[0].mxu1 %v269_v35 }
 0x113   : > { %1587 = vmatpush3.bf16.msra.mxu1 %v1744_v39 }
 0x114   : > { %1588 = vmatprep.subr.bf16.mxu1 %v1745_v40 }
 0x117   : > { %1589 = vmatpush3.bf16.msra.mxu1 %v1745_v40 }
 0x118   : > { %1590 = vmatprep.subr.bf16.mxu1 %v1746_v41 }
 0x11b   : > { %1591 = vmatpush3.bf16.msra.mxu1 %v1746_v41 }
 0x11c   : > { %1592 = vmatprep.subr.bf16.mxu1 %v1747_v42 }
 0x11f   : > { %1593 = vmatpush3.bf16.msra.mxu1 %v1747_v42  ;;  %v1766_v42 = vld [vmem:[#allocation2 + $0x170] sm:$0xff]  }
 0x120   : > { %1594 = vmatprep.subr.bf16.mxu1 %v1748_v43 }
 0x123   : > { %1595 = vmatpush3.bf16.msra.mxu1 %v1748_v43  ;;  %v1767_v43 = vld [vmem:[#allocation2 + $0x178] sm:$0xff]  }
 0x124   : > { %1596 = vmatprep.subr.bf16.mxu1 %v1749_v44 }
 0x127   : > { %1597 = vmatpush3.bf16.msra.mxu1 %v1749_v44  ;;  %v1768_v44 = vld [vmem:[#allocation2 + $0x180] sm:$0xff]  }
 0x128   : > { %1598 = vmatprep.subr.bf16.mxu1 %v1750_v60 }
 0x12b   : > { %1599 = vmatpush3.bf16.msra.mxu1 %v1750_v60 }
 0x12c   : > { %1600 = vmatprep.subr.bf16.mxu1 %v1751_v61 }
 0x12f   : > { %1601 = vmatpush3.bf16.msra.mxu1 %v1751_v61 }
 0x130   : > { %1626 = vmatprep.subr.bf16.mxu1 %v1760_v21 }
 0x1e5   : > { %v1564_v46 = vpop.f32.mrb[0].mxu1 }
 0x1e6   : > { %v386_v47 = vadd.f32 %v1564_v46, %v1376_v45  ;;  %v377_v48 = vpop.f32.mrb[1].mxu1  ;;  %v1770_v46 = vld [vmem:[#allocation2 + $0x190] sm:$0xff]  }
 0x1e7   : > { %v378_v49 = vadd.f32 %v1376_v45, %v377_v48  ;;  %v1565_v50 = vpop.f32.mrb[2].mxu1  ;;  %v1772_v48 = vld [vmem:[#allocation2 + $0x1a0] sm:$0xff]  }
 0x1e8   : > { %v389_v51 = vadd.f32 %v1565_v50, %v1376_v45  ;;  %v380_v52 = vpop.f32.mrb[3].mxu1  ;;  %v394_v54 = vmax.f32 %v386_v47, 0.0  ;;  %v1771_v47 = vld [vmem:[#allocation2 + $0x198] sm:$0xff]   ;;  %v1406_v50 = vld [vmem:[%s1950_s2 + $0x4] ss:$0 sm:$0xff] }
 0x1e9   : > { %v381_v53 = vadd.f32 %v1376_v45, %v380_v52  ;;  %v392_v56 = vmax.f32 %v378_v49, 0.0  ;;  %v1769_v45 = vld [vmem:[#allocation2 + $0x188] sm:$0xff]  }
 0x1ea   : > { %v395_v55 = vmax.f32 %v389_v51, 0.0  ;;  %v1773_v49 = vld [vmem:[#allocation2 + $0x1a8] sm:$0xff]  }
 0x1eb   : > { %v393_v57 = vmax.f32 %v381_v53, 0.0 }
 0x1ec   : > { %v397_v58 = vpack.c.bf16 %v395_v55, %v394_v54 }
 0x1ed   : > { %v396_v59 = vpack.c.bf16 %v393_v57, %v392_v56 }
 0x1ef   : > { %1582 = vmatprep.mubr.bf16.mxu0 %v396_v59 }
 0x1f0   : > { %1583 = vmatmul.mubr.bf16.vlgmr.msra.gmra.mrb[4].mxu0 %v397_v58 }
 0x1f1   : > { %1607 = vmatpush3.bf16.msra.mxu0 %v1752_v62 }
 0x1f2   : > { %1608 = vmatprep.subr.bf16.mxu0 %v1753_v63 }
 0x1f5   : > { %1609 = vmatpush3.bf16.msra.mxu0 %v1753_v63 }
 0x1f6   : > { %1610 = vmatprep.subr.bf16.mxu0 %v1754_v0 }
 0x1f9   : > { %1611 = vmatpush3.bf16.msra.mxu0 %v1754_v0 }
 0x1fa   : > { %1612 = vmatprep.subr.bf16.mxu0 %v1755_v1 }
 0x1fd   : > { %1613 = vmatpush3.bf16.msra.mxu0 %v1755_v1  ;;  %v1774_v1 = vld [vmem:[#allocation2 + $0x1b0] sm:$0xff]  }
 0x1fe   : > { %1614 = vmatprep.subr.bf16.mxu0 %v1756_v2 }
 0x201   : > { %1615 = vmatpush3.bf16.msra.mxu0 %v1756_v2  ;;  %v1775_v2 = vld [vmem:[#allocation2 + $0x1b8] sm:$0xff]  }
 0x202   : > { %1616 = vmatprep.subr.bf16.mxu0 %v1757_v3 }
 0x205   : > { %1617 = vmatpush3.bf16.msra.mxu0 %v1757_v3  ;;  %v1776_v3 = vld [vmem:[#allocation2 + $0x1c0] sm:$0xff]  }
 0x206   : > { %1618 = vmatprep.subr.bf16.mxu0 %v1758_v19 }
 0x209   : > { %1619 = vmatpush3.bf16.msra.mxu0 %v1758_v19 }
 0x20a   : > { %1620 = vmatprep.subr.bf16.mxu0 %v1759_v20 }
 0x20d   : > { %1621 = vmatpush3.bf16.msra.mxu0 %v1759_v20 }
 0x20e   : > { %1646 = vmatprep.subr.bf16.mxu0 %v1768_v44 }
 0x2c3   : > { %v1584_v5 = vpop.f32.mrb[4].mxu0 }
 0x2c4   : > { %v514_v6 = vadd.f32 %v1584_v5, %v1386_v4  ;;  %v505_v7 = vpop.f32.mrb[5].mxu0  ;;  %v1778_v5 = vld [vmem:[#allocation2 + $0x1d0] sm:$0xff]  }
 0x2c5   : > { %v506_v8 = vadd.f32 %v1386_v4, %v505_v7  ;;  %v1585_v9 = vpop.f32.mrb[6].mxu0  ;;  %v1780_v7 = vld [vmem:[#allocation2 + $0x1e0] sm:$0xff]  }
 0x2c6   : > { %v517_v10 = vadd.f32 %v1585_v9, %v1386_v4  ;;  %v508_v11 = vpop.f32.mrb[7].mxu0  ;;  %v522_v13 = vmax.f32 %v514_v6, 0.0  ;;  %v1779_v6 = vld [vmem:[#allocation2 + $0x1d8] sm:$0xff]   ;;  %v1416_v9 = vld [vmem:[%s1950_s2 + $0x5] ss:$0 sm:$0xff] }
 0x2c7   : > { %v509_v12 = vadd.f32 %v1386_v4, %v508_v11  ;;  %v520_v15 = vmax.f32 %v506_v8, 0.0  ;;  %v1777_v4 = vld [vmem:[#allocation2 + $0x1c8] sm:$0xff]  }
 0x2c8   : > { %v523_v14 = vmax.f32 %v517_v10, 0.0  ;;  %v1781_v8 = vld [vmem:[#allocation2 + $0x1e8] sm:$0xff]  }
 0x2c9   : > { %v521_v16 = vmax.f32 %v509_v12, 0.0 }
 0x2ca   : > { %v525_v17 = vpack.c.bf16 %v523_v14, %v522_v13 }
 0x2cb   : > { %v524_v18 = vpack.c.bf16 %v521_v16, %v520_v15 }
 0x2cd   : > { %1602 = vmatprep.mubr.bf16.mxu1 %v524_v18 }
 0x2ce   : > { %1603 = vmatmul.mubr.bf16.vlgmr.msra.gmra.mrb[4].mxu1 %v525_v17 }
 0x2cf   : > { %1627 = vmatpush3.bf16.msra.mxu1 %v1760_v21 }
 0x2d0   : > { %1628 = vmatprep.subr.bf16.mxu1 %v1761_v22 }
 0x2d3   : > { %1629 = vmatpush3.bf16.msra.mxu1 %v1761_v22 }
 0x2d4   : > { %1630 = vmatprep.subr.bf16.mxu1 %v1762_v23 }
 0x2d7   : > { %1631 = vmatpush3.bf16.msra.mxu1 %v1762_v23 }
 0x2d8   : > { %1632 = vmatprep.subr.bf16.mxu1 %v1763_v24 }
 0x2db   : > { %1633 = vmatpush3.bf16.msra.mxu1 %v1763_v24  ;;  %v1782_v24 = vld [vmem:[#allocation2 + $0x1f0] sm:$0xff]  }
 0x2dc   : > { %1634 = vmatprep.subr.bf16.mxu1 %v1764_v25 }
 0x2df   : > { %1635 = vmatpush3.bf16.msra.mxu1 %v1764_v25  ;;  %v1783_v25 = vld [vmem:[#allocation2 + $0x1f8] sm:$0xff]  }
 0x2e0   : > { %1636 = vmatprep.subr.bf16.mxu1 %v1765_v26 }
 0x2e3   : > { %1637 = vmatpush3.bf16.msra.mxu1 %v1765_v26  ;;  %v1784_v26 = vld [vmem:[#allocation2 + $0x200] sm:$0xff]  }
 0x2e4   : > { %1638 = vmatprep.subr.bf16.mxu1 %v1766_v42 }
 0x2e7   : > { %1639 = vmatpush3.bf16.msra.mxu1 %v1766_v42 }
 0x2e8   : > { %1640 = vmatprep.subr.bf16.mxu1 %v1767_v43 }
 0x2eb   : > { %1641 = vmatpush3.bf16.msra.mxu1 %v1767_v43 }
 0x2ec   : > { %1666 = vmatprep.subr.bf16.mxu1 %v1776_v3 }
 0x3a1   : > { %v1604_v28 = vpop.f32.mrb[4].mxu1 }
 0x3a2   : > { %v642_v29 = vadd.f32 %v1604_v28, %v1396_v27  ;;  %v633_v30 = vpop.f32.mrb[5].mxu1  ;;  %v1786_v28 = vld [vmem:[#allocation2 + $0x210] sm:$0xff]  }
 0x3a3   : > { %v634_v31 = vadd.f32 %v1396_v27, %v633_v30  ;;  %v1605_v32 = vpop.f32.mrb[6].mxu1  ;;  %v1788_v30 = vld [vmem:[#allocation2 + $0x220] sm:$0xff]  }
 0x3a4   : > { %v645_v33 = vadd.f32 %v1605_v32, %v1396_v27  ;;  %v636_v34 = vpop.f32.mrb[7].mxu1  ;;  %v650_v36 = vmax.f32 %v642_v29, 0.0  ;;  %v1787_v29 = vld [vmem:[#allocation2 + $0x218] sm:$0xff]   ;;  %v1426_v32 = vld [vmem:[%s1950_s2 + $0x6] ss:$0 sm:$0xff] }
 0x3a5   : > { %v637_v35 = vadd.f32 %v1396_v27, %v636_v34  ;;  %v648_v38 = vmax.f32 %v634_v31, 0.0  ;;  %v1785_v27 = vld [vmem:[#allocation2 + $0x208] sm:$0xff]  }
 0x3a6   : > { %v651_v37 = vmax.f32 %v645_v33, 0.0  ;;  %v1789_v31 = vld [vmem:[#allocation2 + $0x228] sm:$0xff]  }
 0x3a7   : > { %v649_v39 = vmax.f32 %v637_v35, 0.0 }
 0x3a8   : > { %v653_v40 = vpack.c.bf16 %v651_v37, %v650_v36 }
 0x3a9   : > { %v652_v41 = vpack.c.bf16 %v649_v39, %v648_v38 }
 0x3ab   : > { %1622 = vmatprep.mubr.bf16.mxu0 %v652_v41 }
 0x3ac   : > { %1623 = vmatmul.mubr.bf16.vlgmr.msra.gmra.mrb[8].mxu0 %v653_v40 }
 0x3ad   : > { %1647 = vmatpush3.bf16.msra.mxu0 %v1768_v44 }
 0x3ae   : > { %1648 = vmatprep.subr.bf16.mxu0 %v1769_v45 }
 0x3b1   : > { %1649 = vmatpush3.bf16.msra.mxu0 %v1769_v45 }
 0x3b2   : > { %1650 = vmatprep.subr.bf16.mxu0 %v1770_v46 }
 0x3b5   : > { %1651 = vmatpush3.bf16.msra.mxu0 %v1770_v46 }
 0x3b6   : > { %1652 = vmatprep.subr.bf16.mxu0 %v1771_v47 }
 0x3b9   : > { %1653 = vmatpush3.bf16.msra.mxu0 %v1771_v47  ;;  %v1790_v47 = vld [vmem:[#allocation2 + $0x230] sm:$0xff]  }
 0x3ba   : > { %1654 = vmatprep.subr.bf16.mxu0 %v1772_v48 }
 0x3bd   : > { %1655 = vmatpush3.bf16.msra.mxu0 %v1772_v48  ;;  %v1791_v48 = vld [vmem:[#allocation2 + $0x238] sm:$0xff]  }
 0x3be   : > { %1656 = vmatprep.subr.bf16.mxu0 %v1773_v49 }
 0x3c1   : > { %1657 = vmatpush3.bf16.msra.mxu0 %v1773_v49  ;;  %v1436_v49 = vld [vmem:[%s1950_s2 + $0x7] ss:$0 sm:$0xff] }
 0x3c2   : > { %1658 = vmatprep.subr.bf16.mxu0 %v1774_v1 }
 0x3c5   : > { %1659 = vmatpush3.bf16.msra.mxu0 %v1774_v1 }
 0x3c6   : > { %1660 = vmatprep.subr.bf16.mxu0 %v1775_v2 }
 0x3c9   : > { %1661 = vmatpush3.bf16.msra.mxu0 %v1775_v2 }
 0x3ca   : > { %1686 = vmatprep.subr.bf16.mxu0 %v1784_v26 }
 0x47f   : > { %v1624_v51 = vpop.f32.mrb[8].mxu0 }
 0x480   : > { %v770_v52 = vadd.f32 %v1624_v51, %v1406_v50  ;;  %v761_v53 = vpop.f32.mrb[9].mxu0 }
 0x481   : > { %v762_v54 = vadd.f32 %v1406_v50, %v761_v53  ;;  %v1625_v55 = vpop.f32.mrb[10].mxu0 }
 0x482   : > { %v773_v56 = vadd.f32 %v1625_v55, %v1406_v50  ;;  %v764_v57 = vpop.f32.mrb[11].mxu0  ;;  %v778_v59 = vmax.f32 %v770_v52, 0.0 }
 0x483   : > { %v765_v58 = vadd.f32 %v1406_v50, %v764_v57  ;;  %v776_v61 = vmax.f32 %v762_v54, 0.0 }
 0x484   : > { %v779_v60 = vmax.f32 %v773_v56, 0.0 }
 0x485   : > { %v777_v62 = vmax.f32 %v765_v58, 0.0 }
 0x486   : > { %v781_v63 = vpack.c.bf16 %v779_v60, %v778_v59 }
 0x487   : > { %v780_v0 = vpack.c.bf16 %v777_v62, %v776_v61 }
 0x489   : > { %1642 = vmatprep.mubr.bf16.mxu1 %v780_v0  ;;  %v1446_v0 = vld [vmem:[%s1950_s2 + $0x8] ss:$0 sm:$0xff] }
 0x48a   : > { %1643 = vmatmul.mubr.bf16.vlgmr.msra.gmra.mrb[8].mxu1 %v781_v63 }
 0x48b   : > { %1667 = vmatpush3.bf16.msra.mxu1 %v1776_v3 }
 0x48c   : > { %1668 = vmatprep.subr.bf16.mxu1 %v1777_v4 }
 0x48f   : > { %1669 = vmatpush3.bf16.msra.mxu1 %v1777_v4 }
 0x490   : > { %1670 = vmatprep.subr.bf16.mxu1 %v1778_v5 }
 0x493   : > { %1671 = vmatpush3.bf16.msra.mxu1 %v1778_v5 }
 0x494   : > { %1672 = vmatprep.subr.bf16.mxu1 %v1779_v6 }
 0x497   : > { %1673 = vmatpush3.bf16.msra.mxu1 %v1779_v6 }
 0x498   : > { %1674 = vmatprep.subr.bf16.mxu1 %v1780_v7 }
 0x49b   : > { %1675 = vmatpush3.bf16.msra.mxu1 %v1780_v7 }
 0x49c   : > { %1676 = vmatprep.subr.bf16.mxu1 %v1781_v8 }
 0x49f   : > { %1677 = vmatpush3.bf16.msra.mxu1 %v1781_v8 }
 0x4a0   : > { %1678 = vmatprep.subr.bf16.mxu1 %v1782_v24 }
 0x4a3   : > { %1679 = vmatpush3.bf16.msra.mxu1 %v1782_v24 }
 0x4a4   : > { %1680 = vmatprep.subr.bf16.mxu1 %v1783_v25 }
 0x4a7   : > { %1681 = vmatpush3.bf16.msra.mxu1 %v1783_v25 }
 0x55d   : > { %v1644_v10 = vpop.f32.mrb[8].mxu1 }
 0x55e   : > { %v898_v11 = vadd.f32 %v1644_v10, %v1416_v9  ;;  %v889_v12 = vpop.f32.mrb[9].mxu1 }
 0x55f   : > { %v890_v13 = vadd.f32 %v1416_v9, %v889_v12  ;;  %v1645_v14 = vpop.f32.mrb[10].mxu1 }
 0x560   : > { %v901_v15 = vadd.f32 %v1645_v14, %v1416_v9  ;;  %v892_v16 = vpop.f32.mrb[11].mxu1  ;;  %v906_v18 = vmax.f32 %v898_v11, 0.0 }
 0x561   : > { %v893_v17 = vadd.f32 %v1416_v9, %v892_v16  ;;  %v904_v20 = vmax.f32 %v890_v13, 0.0 }
 0x562   : > { %v907_v19 = vmax.f32 %v901_v15, 0.0 }
 0x563   : > { %v905_v21 = vmax.f32 %v893_v17, 0.0 }
 0x564   : > { %v909_v22 = vpack.c.bf16 %v907_v19, %v906_v18 }
 0x565   : > { %v908_v23 = vpack.c.bf16 %v905_v21, %v904_v20 }
 0x567   : > { %1662 = vmatprep.mubr.bf16.mxu0 %v908_v23 }
 0x568   : > { %1663 = vmatmul.mubr.bf16.vlgmr.msra.gmra.mrb[12].mxu0 %v909_v22 }
 0x569   : > { %1687 = vmatpush3.bf16.msra.mxu0 %v1784_v26 }
 0x56a   : > { %1688 = vmatprep.subr.bf16.mxu0 %v1785_v27 }
 0x56d   : > { %1689 = vmatpush3.bf16.msra.mxu0 %v1785_v27 }
 0x56e   : > { %1690 = vmatprep.subr.bf16.mxu0 %v1786_v28 }
 0x571   : > { %1691 = vmatpush3.bf16.msra.mxu0 %v1786_v28 }
 0x572   : > { %1692 = vmatprep.subr.bf16.mxu0 %v1787_v29 }
 0x575   : > { %1693 = vmatpush3.bf16.msra.mxu0 %v1787_v29 }
 0x576   : > { %1694 = vmatprep.subr.bf16.mxu0 %v1788_v30 }
 0x579   : > { %1695 = vmatpush3.bf16.msra.mxu0 %v1788_v30 }
 0x57a   : > { %1696 = vmatprep.subr.bf16.mxu0 %v1789_v31 }
 0x57d   : > { %1697 = vmatpush3.bf16.msra.mxu0 %v1789_v31 }
 0x57e   : > { %1698 = vmatprep.subr.bf16.mxu0 %v1790_v47 }
 0x581   : > { %1699 = vmatpush3.bf16.msra.mxu0 %v1790_v47 }
 0x582   : > { %1700 = vmatprep.subr.bf16.mxu0 %v1791_v48 }
 0x585   : > { %1701 = vmatpush3.bf16.msra.mxu0 %v1791_v48 }
 0x63b   : > { %v1664_v33 = vpop.f32.mrb[12].mxu0 }
 0x63c   : > { %v1026_v34 = vadd.f32 %v1664_v33, %v1426_v32  ;;  %v1017_v35 = vpop.f32.mrb[13].mxu0 }
 0x63d   : > { %v1018_v36 = vadd.f32 %v1426_v32, %v1017_v35  ;;  %v1665_v37 = vpop.f32.mrb[14].mxu0 }
 0x63e   : > { %v1029_v38 = vadd.f32 %v1665_v37, %v1426_v32  ;;  %v1020_v39 = vpop.f32.mrb[15].mxu0  ;;  %v1034_v41 = vmax.f32 %v1026_v34, 0.0 }
 0x63f   : > { %v1021_v40 = vadd.f32 %v1426_v32, %v1020_v39  ;;  %v1032_v43 = vmax.f32 %v1018_v36, 0.0 }
 0x640   : > { %v1035_v42 = vmax.f32 %v1029_v38, 0.0 }
 0x641   : > { %v1033_v44 = vmax.f32 %v1021_v40, 0.0 }
 0x642   : > { %v1037_v45 = vpack.c.bf16 %v1035_v42, %v1034_v41 }
 0x643   : > { %v1036_v46 = vpack.c.bf16 %v1033_v44, %v1032_v43 }
 0x645   : > { %1682 = vmatprep.mubr.bf16.mxu1 %v1036_v46 }
 0x646   : > { %1683 = vmatmul.mubr.bf16.vlgmr.msra.gmra.mrb[12].mxu1 %v1037_v45 }
 0x719   : > { %v1684_v50 = vpop.f32.mrb[12].mxu1 }
 0x71a   : > { %v1154_v51 = vadd.f32 %v1684_v50, %v1436_v49  ;;  %v1145_v52 = vpop.f32.mrb[13].mxu1 }
 0x71b   : > { %v1146_v53 = vadd.f32 %v1436_v49, %v1145_v52  ;;  %v1685_v54 = vpop.f32.mrb[14].mxu1 }
 0x71c   : > { %v1157_v55 = vadd.f32 %v1685_v54, %v1436_v49  ;;  %v1148_v56 = vpop.f32.mrb[15].mxu1  ;;  %v1162_v58 = vmax.f32 %v1154_v51, 0.0 }
 0x71d   : > { %v1149_v57 = vadd.f32 %v1436_v49, %v1148_v56  ;;  %v1160_v60 = vmax.f32 %v1146_v53, 0.0 }
 0x71e   : > { %v1163_v59 = vmax.f32 %v1157_v55, 0.0 }
 0x71f   : > { %v1161_v61 = vmax.f32 %v1149_v57, 0.0 }
 0x720   : > { %v1165_v62 = vpack.c.bf16 %v1163_v59, %v1162_v58 }
 0x721   : > { %v1164_v63 = vpack.c.bf16 %v1161_v61, %v1160_v60 }
 0x723   : > { %1702 = vmatprep.mubr.bf16.mxu0 %v1164_v63 }
 0x724   : > { %1703 = vmatmul.mubr.bf16.vlgmr.msra.gmra.mrb[16].mxu0 %v1165_v62 }
 0x7f7   : > { %v1704_v1 = vpop.f32.mrb[16].mxu0 }
 0x7f8   : > { %v1273_v2 = vpop.f32.mrb[17].mxu0  ;;  %v1282_v7 = vadd.f32 %v1704_v1, %v1446_v0 }
 0x7f9   : > { %v1274_v3 = vadd.f32 %v1446_v0, %v1273_v2  ;;  %v1705_v4 = vpop.f32.mrb[18].mxu0 }
 0x7fa   : > { %v1276_v5 = vpop.f32.mrb[19].mxu0  ;;  %v1285_v8 = vadd.f32 %v1705_v4, %v1446_v0  ;;  %1291 = vst.msk [vmem:[%s187_s30 + $0x10] sm:$0xff] %vm1288_vm2, %v1282_v7 }
 0x7fb   : > { %1289 = vst.msk [vmem:[%s187_s30] sm:$0xff] %vm1288_vm2, %v1274_v3  ;;  %v1277_v6 = vadd.f32 %v1446_v0, %v1276_v5 }
 0x7fc   : > { %1292 = vst.msk [vmem:[%s187_s30 + $0x18] sm:$0xff] %vm1288_vm2, %v1285_v8 }
 0x7fd   : > { %1290 = vst.msk [vmem:[%s187_s30 + $0x8] sm:$0xff] %vm1288_vm2, %v1277_v6 }
 0x7fe PF: > { %s14_s12 = sadd.s32 1, %s1830_s12  }
 0x7ff   : > { %p11_p3 = scmp.ge.s32.totalorder %s14_s12, 4  }
 0x801   :  { %13 = sbr.rel (!%p11_p3) target bundleno = 1 (0x1), region = 83 }
 0x808   :  { %1315 = vsyncpa [#allocation3], 1 }
 0x809   :  { %1317 = vsyncpa [#allocation3 + $0x1], 1 }

</bundles_post_ra>
